<compile_context>
chip_gen: v6e
topology: v6e:2x2x1
jax: 0.10.0
libtpu: 0.0.40
codegen_flags: <defaults>
</compile_context>

<pallas_src>
import functools

import numpy as np
import jax
import jax.numpy as jnp
from jax.experimental import pallas as pl
from jax.experimental.pallas import tpu as pltpu

BN_EPS = 1e-5


def _round_up(x, m):
    return (x + m - 1) // m * m


def _sublane(dtype):
    # 8 rows/sublane-tile for 32-bit, 16 for bf16, 32 for 8-bit types.
    return 32 // jnp.dtype(dtype).itemsize


# ---------------------------------------------------------------------------
# Wrapper-side layout helpers (single fused pad/cast pass per tensor)
# ---------------------------------------------------------------------------
def _guarded_flat(x, pad, cin_p, guard, lbuf, dtype):
    """(N, C, H, W) -> (N, cin_p, lbuf): zero-padded image flattened with row stride
    Wp = W + 2*pad, preceded by `guard` zero lanes, zero tail to lbuf."""
    N, C, H, W = x.shape
    Hp, Wp = H + 2 * pad, W + 2 * pad
    xp = jnp.pad(x, ((0, 0), (0, cin_p - C), (pad, pad), (pad, pad)))
    xf = xp.reshape(N, cin_p, Hp * Wp)
    xf = jnp.pad(xf, ((0, 0), (0, 0), (guard, lbuf - guard - Hp * Wp)))
    return xf.astype(dtype)


def _pack_conv_weights(w, scale, cin_p, cout_p, dtype):
    """HWIO (KH,KW,Cin,Cout) + BN scale -> packed (cout_p, KH*KW*cin_p), column
    t*cin_p + ci <-> tap t = di*KW + dj, input channel ci (matches the slab layout)."""
    KH, KW, Cin, Cout = w.shape
    wt = jnp.transpose(w, (0, 1, 3, 2)) * scale[None, None, :, None]   # (KH,KW,Cout,Cin)
    wt = jnp.pad(wt, ((0, 0), (0, 0), (0, cout_p - Cout), (0, cin_p - Cin)))
    wt = jnp.transpose(wt, (2, 0, 1, 3)).reshape(cout_p, KH * KW * cin_p)
    return wt.astype(dtype)


def _pad_bias(b, cout_p):
    return jnp.pad(b.reshape(-1, 1), ((0, cout_p - b.shape[0]), (0, 0))).astype(jnp.float32)


# ---------------------------------------------------------------------------
# Fused BasicBlock kernel (stride (1,1), padding 1)
# ---------------------------------------------------------------------------
def _basic_block_kernel(x_ref, w1_ref, b1_ref, w2_ref, b2_ref, mask_ref, *rest,
                        tap_offsets, shift, guard, out_cols, cin_p, cm_p,
                        has_projection):
    if has_projection:
        wsc_ref, bsc_ref, out_ref, slab_ref, hg_ref = rest
    else:
        out_ref, slab_ref, hg_ref = rest

    L = out_cols
    x = x_ref[0]                                           # (cin_p, Lg), VMEM resident

    # ---- conv1: pack 9 taps into one (K1, L) slab -> single MXU contraction ----
    for t, off in enumerate(tap_offsets):                  # static unroll
        slab_ref[t * cin_p:(t + 1) * cin_p, :] = x[:, off + shift: off + shift + L]
    k1 = len(tap_offsets) * cin_p
    h = jnp.dot(w1_ref[...], slab_ref[0:k1, :], preferred_element_type=jnp.float32)
    h = jnp.maximum(h + b1_ref[...], 0.0)                  # folded-BN bias + ReLU (f32)
    h = h * mask_ref[...]                                  # zero non-interior columns

    # Masked h IS conv2's zero-padded input in the guarded wide layout.
    hg_ref[...] = jnp.zeros_like(hg_ref)                   # guard + tail zeros
    hg_ref[:, guard:guard + L] = h.astype(hg_ref.dtype)    # lane-aligned store

    # ---- conv2 on the VMEM-resident intermediate (never touches HBM) ----
    hg = hg_ref[...]
    for t, off in enumerate(tap_offsets):
        slab_ref[t * cm_p:(t + 1) * cm_p, :] = hg[:, off + shift: off + shift + L]
    k2 = len(tap_offsets) * cm_p
    out = jnp.dot(w2_ref[...], slab_ref[0:k2, :], preferred_element_type=jnp.float32)
    out = out + b2_ref[...]

    # ---- shortcut: fused 1x1 conv + BN projection, or identity slice of x ----
    if has_projection:
        res = jnp.dot(wsc_ref[...], x[:, guard:guard + L],
                      preferred_element_type=jnp.float32) + bsc_ref[...]
    else:
        res = x[:, guard:guard + L].astype(jnp.float32)

    out_ref[0] = jnp.maximum(out + res, 0.0).astype(out_ref.dtype)


def basic_block_fused_pallas(x, params, *, compute_dtype=jnp.float32):
    """Whole BasicBlock (stride (1,1), padding 1) as ONE Pallas kernel per image."""
    N, Cin, H, W = x.shape
    KH, KW, _, Cmid = params["w1"].shape
    Cout = params["w2"].shape[-1]
    assert (KH, KW) == (3, 3)

    sub = _sublane(compute_dtype)
    cin_p = _round_up(Cin, sub)
    cm_p = _round_up(Cmid, sub)
    co_p = _round_up(Cout, sub)

    pad = 1
    Wp, Hp = W + 2 * pad, H + 2 * pad
    guard = _round_up(Wp + 1, 128)          # lane-aligned zero guard before the image
    shift = guard - (Wp + 1)                # tap-read offset correction
    L = _round_up((H + 1) * Wp, 128)        # matmul columns = padded-grid positions
    max_off = (KH - 1) * Wp + (KW - 1)
    Lg = _round_up(max(guard + Hp * Wp, L + max_off + shift), 128)
    K1, K2 = KH * KW * cin_p, KH * KW * cm_p

    # ---- wrapper prep (one fused pad/cast pass per tensor; weights are tiny) ----
    xg = _guarded_flat(x, pad, cin_p, guard, Lg, compute_dtype)
    w1p = _pack_conv_weights(params["w1"], params["s1"], cin_p, cm_p, compute_dtype)
    b1 = _pad_bias(params["b1"], cm_p)
    w2p = _pack_conv_weights(params["w2"], params["s2"], cm_p, co_p, compute_dtype)
    b2 = _pad_bias(params["b2"], co_p)

    # Interior-column mask (compile-time constant): 1 at c = (ho+1)*Wp + (wo+1).
    pos = np.arange(L)
    row, col = pos // Wp, pos % Wp
    interior = (row >= 1) & (row <= H) & (col >= 1) & (col <= W)
    mask = jnp.asarray(interior.astype(np.float32)).reshape(1, L)

    has_proj = (Cin != Cout)
    inputs = [xg, w1p, b1, w2p, b2, mask]
    in_specs = [
        pl.BlockSpec((1, cin_p, Lg), lambda n: (n, 0, 0)),
        pl.BlockSpec((cm_p, K1), lambda n: (0, 0)),
        pl.BlockSpec((cm_p, 1), lambda n: (0, 0)),
        pl.BlockSpec((co_p, K2), lambda n: (0, 0)),
        pl.BlockSpec((co_p, 1), lambda n: (0, 0)),
        pl.BlockSpec((1, L), lambda n: (0, 0)),
    ]
    if has_proj:
        wscp = _pack_conv_weights(params["wsc"], params["ssc"], cin_p, co_p, compute_dtype)
        bsc = _pad_bias(params["bsc"], co_p)
        inputs += [wscp, bsc]
        in_specs += [pl.BlockSpec((co_p, cin_p), lambda n: (0, 0)),
                     pl.BlockSpec((co_p, 1), lambda n: (0, 0))]

    tap_offsets = tuple(di * Wp + dj for di in range(KH) for dj in range(KW))
    kernel = functools.partial(
        _basic_block_kernel, tap_offsets=tap_offsets, shift=shift, guard=guard,
        out_cols=L, cin_p=cin_p, cm_p=cm_p, has_projection=has_proj)

    wide = pl.pallas_call(
        kernel,
        out_shape=jax.ShapeDtypeStruct((N, co_p, L), compute_dtype),
        grid=(N,),
        in_specs=in_specs,
        out_specs=pl.BlockSpec((1, co_p, L), lambda n: (n, 0, 0)),
        scratch_shapes=[pltpu.VMEM((max(K1, K2), L), compute_dtype),  # packed-K slab
                        pltpu.VMEM((cm_p, Lg), compute_dtype)],       # guarded intermediate
        compiler_params=pltpu.CompilerParams(
            dimension_semantics=("parallel",)),
    )(*inputs)

    # Crop valid positions back to dense NCHW (output-only wrapper pass).
    dense = wide[:, :Cout, Wp:(H + 1) * Wp].reshape(N, Cout, H, Wp)
    return dense[:, :, :, 1:1 + W]


# ---------------------------------------------------------------------------
# Generic single conv + folded-BN (+ReLU) kernel (fallback for strided configs)
# ---------------------------------------------------------------------------
def _conv_bn_kernel(x_ref, w_ref, b_ref, out_ref, slab_ref, *,
                    tap_offsets, cin_p, out_cols, apply_relu):
    L = out_cols
    x = x_ref[0]
    for t, off in enumerate(tap_offsets):
        slab_ref[t * cin_p:(t + 1) * cin_p, :] = x[:, off:off + L]
    k = len(tap_offsets) * cin_p
    out = jnp.dot(w_ref[...], slab_ref[0:k, :], preferred_element_type=jnp.float32)
    out = out + b_ref[...]
    if apply_relu:
        out = jnp.maximum(out, 0.0)
    out_ref[0] = out.astype(out_ref.dtype)


def conv2d_bn_pallas(x, w, scale, bias, *, stride=1, padding=0, apply_relu=False,
                     compute_dtype=jnp.float32):
    """Conv2d (no bias) + eval-mode BN (+ ReLU), any stride, packed-K single matmul."""
    N, Cin, H, W = x.shape
    KH, KW, _, Cout = w.shape
    s = int(stride)
    sub = _sublane(compute_dtype)
    cin_p = _round_up(Cin, sub)
    co_p = _round_up(Cout, sub)

    Hp, Wp = H + 2 * padding, W + 2 * padding
    Ho = (Hp - KH) // s + 1
    Wo = (Wp - KW) // s + 1
    nrows = (Ho - 1) * s + 1
    L = _round_up(nrows * Wp, 128)
    max_off = (KH - 1) * Wp + (KW - 1)
    Lbuf = _round_up(max(Hp * Wp, L + max_off), 128)
    K = KH * KW * cin_p

    xg = _guarded_flat(x, padding, cin_p, 0, Lbuf, compute_dtype)
    wp = _pack_conv_weights(w, scale, cin_p, co_p, compute_dtype)
    b = _pad_bias(bias, co_p)

    tap_offsets = tuple(di * Wp + dj for di in range(KH) for dj in range(KW))
    kernel = functools.partial(_conv_bn_kernel, tap_offsets=tap_offsets,
                               cin_p=cin_p, out_cols=L, apply_relu=apply_relu)

    wide = pl.pallas_call(
        kernel,
        out_shape=jax.ShapeDtypeStruct((N, co_p, L), compute_dtype),
        grid=(N,),
        in_specs=[pl.BlockSpec((1, cin_p, Lbuf), lambda n: (n, 0, 0)),
                  pl.BlockSpec((co_p, K), lambda n: (0, 0)),
                  pl.BlockSpec((co_p, 1), lambda n: (0, 0))],
        out_specs=pl.BlockSpec((1, co_p, L), lambda n: (n, 0, 0)),
        scratch_shapes=[pltpu.VMEM((K, L), compute_dtype)],
        compiler_params=pltpu.CompilerParams(
            dimension_semantics=("parallel",)),
    )(xg, wp, b)

    dense = wide[:, :Cout, :nrows * Wp].reshape(N, Cout, nrows, Wp)
    return dense[:, :, ::s, 0:(Wo - 1) * s + 1:s]


# ---------------------------------------------------------------------------
# BasicBlock forward (Pallas)
# ---------------------------------------------------------------------------
def basic_block_forward(x, params, stride=(1, 1), padding=1, compute_dtype=jnp.float32):
    stride = tuple(int(s) for s in stride)
    if stride == (1, 1) and padding == 1:
        return basic_block_fused_pallas(x, params, compute_dtype=compute_dtype)

    # Strided fallback: per-conv packed-K kernels, residual add + final ReLU in wrapper.
    in_ch, out_ch = x.shape[1], params["w1"].shape[-1]
    h = conv2d_bn_pallas(x, params["w1"], params["s1"], params["b1"], stride=stride[0],
                         padding=padding, apply_relu=True, compute_dtype=compute_dtype)
    if stride[0] != 1 or in_ch != out_ch:
        sc = conv2d_bn_pallas(x, params["wsc"], params["ssc"], params["bsc"],
                              stride=stride[0], padding=0, apply_relu=False,
                              compute_dtype=compute_dtype)
    else:
        sc = x
    out = conv2d_bn_pallas(h, params["w2"], params["s2"], params["b2"], stride=stride[1],
                           padding=padding, apply_relu=False, compute_dtype=compute_dtype)
    return jnp.maximum(out.astype(jnp.float32) + sc.astype(jnp.float32), 0.0
                       ).astype(compute_dtype)


# ---------------------------------------------------------------------------
# Parameter init (deterministic, synthetic) and pure-JAX reference
# ---------------------------------------------------------------------------
def _fold_bn(gamma, beta, mean, var, eps=BN_EPS):
    scale = gamma / jnp.sqrt(var + eps)
    bias = beta - mean * scale
    return scale, bias


def init_basic_block_params(key, in_ch, out_ch):
    ks = jax.random.split(key, 12)

    def conv_w(k, kh, kw, cin, cout):
        bound = 1.0 / np.sqrt(cin * kh * kw)
        return jax.random.uniform(k, (kh, kw, cin, cout), jnp.float32, -bound, bound)

    def bn(kg, kb, km, kv, c):
        gamma = 1.0 + 0.1 * jax.random.normal(kg, (c,), jnp.float32)
        beta = 0.1 * jax.random.normal(kb, (c,), jnp.float32)
        mean = 0.1 * jax.random.normal(km, (c,), jnp.float32)
        var = 1.0 + 0.1 * jax.random.uniform(kv, (c,), jnp.float32)
        return _fold_bn(gamma, beta, mean, var)

    p = {}
    p["w1"] = conv_w(ks[0], 3, 3, in_ch, out_ch)
    p["s1"], p["b1"] = bn(ks[1], ks[2], ks[3], ks[4], out_ch)
    p["w2"] = conv_w(ks[5], 3, 3, out_ch, out_ch)
    p["s2"], p["b2"] = bn(ks[6], ks[7], ks[8], ks[9], out_ch)
    p["wsc"] = conv_w(ks[10], 1, 1, in_ch, out_ch)
    g = jax.random.split(ks[11], 4)
    p["ssc"], p["bsc"] = bn(g[0], g[1], g[2], g[3], out_ch)
    return p


def _conv_ref(x, w, stride, padding):
    return jax.lax.conv_general_dilated(
        x, w, window_strides=(stride, stride),
        padding=[(padding, padding), (padding, padding)],
        dimension_numbers=("NCHW", "HWIO", "NCHW"))


def basic_block_ref(x, params, stride=(1, 1)):
    in_ch = x.shape[1]
    out_ch = params["w1"].shape[-1]

    def bn(y, s, b):
        return y * s[None, :, None, None] + b[None, :, None, None]

    h = jnp.maximum(bn(_conv_ref(x, params["w1"], stride[0], 1),
                       params["s1"], params["b1"]), 0.0)
    out = bn(_conv_ref(h, params["w2"], stride[1], 1), params["s2"], params["b2"])
    if stride[0] != 1 or in_ch != out_ch:
        sc = bn(_conv_ref(x, params["wsc"], stride[0], 0), params["ssc"], params["bsc"])
    else:
        sc = x
    return jnp.maximum(out + sc, 0.0)


# ---------------------------------------------------------------------------
if __name__ == "__main__":
    key = jax.random.PRNGKey(0)
    kx, kp, kx2, kp2 = jax.random.split(key, 4)

    # PyTorch-style input: NCHW (2, 4, 16, 16); in_ch=4 -> out_ch=8, stride=[1,1]
    N, Cin, H, W = 2, 4, 16, 16
    Cout = 8

    x = jax.random.normal(kx, (N, Cin, H, W), jnp.float32)
    params = init_basic_block_params(kp, Cin, Cout)

    fwd = jax.jit(basic_block_forward,
                  static_argnames=("stride", "padding", "compute_dtype"))

    # 1) stride (1,1), projection shortcut (Cin != Cout): fully fused single kernel.
    ref = basic_block_ref(x, params, stride=(1, 1))
    out_f32 = jax.block_until_ready(fwd(x, params, stride=(1, 1),
                                        compute_dtype=jnp.float32))
    np.testing.assert_allclose(np.asarray(out_f32), np.asarray(ref),
                               rtol=1e-4, atol=1e-4)
    assert out_f32.shape == (N, Cout, H, W)

    # 2) bf16 fast path (bf16 MXU, halved activation/weight bytes), f32 accumulation.
    out_bf16 = jax.block_until_ready(fwd(x, params, stride=(1, 1),
                                         compute_dtype=jnp.bfloat16))
    np.testing.assert_allclose(np.asarray(out_bf16, dtype=np.float32),
                               np.asarray(ref), rtol=5e-2, atol=5e-2)

    # 3) identity-shortcut fused path (in_ch == out_ch).
    x_id = jax.random.normal(kx2, (N, Cout, H, W), jnp.float32)
    params_id = init_basic_block_params(kp2, Cout, Cout)
    ref_id = basic_block_ref(x_id, params_id, stride=(1, 1))
    out_id = jax.block_until_ready(fwd(x_id, params_id, stride=(1, 1),
                                       compute_dtype=jnp.float32))
    np.testing.assert_allclose(np.asarray(out_id), np.asarray(ref_id),
                               rtol=1e-4, atol=1e-4)

    # 4) strided fallback path (stride (2,1), projection shortcut).
    ref_s = basic_block_ref(x, params, stride=(2, 1))
    out_s = jax.block_until_ready(fwd(x, params, stride=(2, 1),
                                      compute_dtype=jnp.float32))
    np.testing.assert_allclose(np.asarray(out_s), np.asarray(ref_s),
                               rtol=1e-4, atol=1e-4)
    assert out_s.shape == (N, Cout, H // 2, W // 2)

    print("KERNEL_OK")
</pallas_src>

<mosaic_0001>
module attributes {stable_mosaic.version = 11 : i64} {
  func.func @_basic_block_kernel(%arg0: i32, %arg1: memref<1x8x640xf32, #tpu.memory_space<vmem>>, %arg2: memref<8x72xf32, #tpu.memory_space<vmem>>, %arg3: memref<8x1xf32, #tpu.memory_space<vmem>>, %arg4: memref<8x72xf32, #tpu.memory_space<vmem>>, %arg5: memref<8x1xf32, #tpu.memory_space<vmem>>, %arg6: memref<1x384xf32, #tpu.memory_space<vmem>>, %arg7: memref<8x8xf32, #tpu.memory_space<vmem>>, %arg8: memref<8x1xf32, #tpu.memory_space<vmem>>, %arg9: memref<1x8x384xf32, #tpu.memory_space<vmem>>, %arg10: memref<72x384xf32, #tpu.memory_space<vmem>>, %arg11: memref<8x640xf32, #tpu.memory_space<vmem>>) attributes {dimension_semantics = [#tpu.dimension_semantics<parallel>], iteration_bounds = array<i64: 2>, scalar_prefetch = 0 : i64, scratch_operands = 2 : i64, tpu.core_type = #tpu.core_type<tc>, window_params = [{transform_indices = @transform_0, window_bounds = array<i64: 1, 8, 640>}, {pipeline_mode = #tpu.pipeline_mode<synchronous>, transform_indices = @transform_1, window_bounds = array<i64: 8, 72>}, {pipeline_mode = #tpu.pipeline_mode<synchronous>, transform_indices = @transform_2, window_bounds = array<i64: 8, 1>}, {pipeline_mode = #tpu.pipeline_mode<synchronous>, transform_indices = @transform_3, window_bounds = array<i64: 8, 72>}, {pipeline_mode = #tpu.pipeline_mode<synchronous>, transform_indices = @transform_4, window_bounds = array<i64: 8, 1>}, {pipeline_mode = #tpu.pipeline_mode<synchronous>, transform_indices = @transform_5, window_bounds = array<i64: 1, 384>}, {pipeline_mode = #tpu.pipeline_mode<synchronous>, transform_indices = @transform_6, window_bounds = array<i64: 8, 8>}, {pipeline_mode = #tpu.pipeline_mode<synchronous>, transform_indices = @transform_7, window_bounds = array<i64: 8, 1>}, {transform_indices = @transform_8, window_bounds = array<i64: 1, 8, 384>}]} {
    %c0 = arith.constant 0 : index
    %c0_0 = arith.constant 0 : index
    %c0_1 = arith.constant 0 : index
    %0 = vector.load %arg1[%c0, %c0_0, %c0_1] : memref<1x8x640xf32, #tpu.memory_space<vmem>>, vector<1x8x640xf32>
    %1 = vector.shape_cast %0 : vector<1x8x640xf32> to vector<8x640xf32>
    %2 = vector.extract_strided_slice %1 {offsets = [0, 109], sizes = [8, 384], strides = [1, 1]} : vector<8x640xf32> to vector<8x384xf32>
    %c0_2 = arith.constant 0 : index
    %c0_3 = arith.constant 0 : index
    %3 = vector.load %arg10[%c0_2, %c0_3] : memref<72x384xf32, #tpu.memory_space<vmem>>, vector<8x384xf32>
    tpu.vector_store %arg10[%c0_2, %c0_3], %2 {strides = array<i32>} : memref<72x384xf32, #tpu.memory_space<vmem>>, vector<8x384xf32>,
    %4 = vector.extract_strided_slice %1 {offsets = [0, 110], sizes = [8, 384], strides = [1, 1]} : vector<8x640xf32> to vector<8x384xf32>
    %c8 = arith.constant 8 : index
    %c0_4 = arith.constant 0 : index
    %5 = vector.load %arg10[%c8, %c0_4] : memref<72x384xf32, #tpu.memory_space<vmem>>, vector<8x384xf32>
    tpu.vector_store %arg10[%c8, %c0_4], %4 {strides = array<i32>} : memref<72x384xf32, #tpu.memory_space<vmem>>, vector<8x384xf32>,
    %6 = vector.extract_strided_slice %1 {offsets = [0, 111], sizes = [8, 384], strides = [1, 1]} : vector<8x640xf32> to vector<8x384xf32>
    %c16 = arith.constant 16 : index
    %c0_5 = arith.constant 0 : index
    %7 = vector.load %arg10[%c16, %c0_5] : memref<72x384xf32, #tpu.memory_space<vmem>>, vector<8x384xf32>
    tpu.vector_store %arg10[%c16, %c0_5], %6 {strides = array<i32>} : memref<72x384xf32, #tpu.memory_space<vmem>>, vector<8x384xf32>,
    %8 = vector.extract_strided_slice %1 {offsets = [0, 127], sizes = [8, 384], strides = [1, 1]} : vector<8x640xf32> to vector<8x384xf32>
    %c24 = arith.constant 24 : index
    %c0_6 = arith.constant 0 : index
    %9 = vector.load %arg10[%c24, %c0_6] : memref<72x384xf32, #tpu.memory_space<vmem>>, vector<8x384xf32>
    tpu.vector_store %arg10[%c24, %c0_6], %8 {strides = array<i32>} : memref<72x384xf32, #tpu.memory_space<vmem>>, vector<8x384xf32>,
    %10 = vector.extract_strided_slice %1 {offsets = [0, 128], sizes = [8, 384], strides = [1, 1]} : vector<8x640xf32> to vector<8x384xf32>
    %c32 = arith.constant 32 : index
    %c0_7 = arith.constant 0 : index
    %11 = vector.load %arg10[%c32, %c0_7] : memref<72x384xf32, #tpu.memory_space<vmem>>, vector<8x384xf32>
    tpu.vector_store %arg10[%c32, %c0_7], %10 {strides = array<i32>} : memref<72x384xf32, #tpu.memory_space<vmem>>, vector<8x384xf32>,
    %12 = vector.extract_strided_slice %1 {offsets = [0, 129], sizes = [8, 384], strides = [1, 1]} : vector<8x640xf32> to vector<8x384xf32>
    %c40 = arith.constant 40 : index
    %c0_8 = arith.constant 0 : index
    %13 = vector.load %arg10[%c40, %c0_8] : memref<72x384xf32, #tpu.memory_space<vmem>>, vector<8x384xf32>
    tpu.vector_store %arg10[%c40, %c0_8], %12 {strides = array<i32>} : memref<72x384xf32, #tpu.memory_space<vmem>>, vector<8x384xf32>,
    %14 = vector.extract_strided_slice %1 {offsets = [0, 145], sizes = [8, 384], strides = [1, 1]} : vector<8x640xf32> to vector<8x384xf32>
    %c48 = arith.constant 48 : index
    %c0_9 = arith.constant 0 : index
    %15 = vector.load %arg10[%c48, %c0_9] : memref<72x384xf32, #tpu.memory_space<vmem>>, vector<8x384xf32>
    tpu.vector_store %arg10[%c48, %c0_9], %14 {strides = array<i32>} : memref<72x384xf32, #tpu.memory_space<vmem>>, vector<8x384xf32>,
    %16 = vector.extract_strided_slice %1 {offsets = [0, 146], sizes = [8, 384], strides = [1, 1]} : vector<8x640xf32> to vector<8x384xf32>
    %c56 = arith.constant 56 : index
    %c0_10 = arith.constant 0 : index
    %17 = vector.load %arg10[%c56, %c0_10] : memref<72x384xf32, #tpu.memory_space<vmem>>, vector<8x384xf32>
    tpu.vector_store %arg10[%c56, %c0_10], %16 {strides = array<i32>} : memref<72x384xf32, #tpu.memory_space<vmem>>, vector<8x384xf32>,
    %18 = vector.extract_strided_slice %1 {offsets = [0, 147], sizes = [8, 384], strides = [1, 1]} : vector<8x640xf32> to vector<8x384xf32>
    %c64 = arith.constant 64 : index
    %c0_11 = arith.constant 0 : index
    %19 = vector.load %arg10[%c64, %c0_11] : memref<72x384xf32, #tpu.memory_space<vmem>>, vector<8x384xf32>
    tpu.vector_store %arg10[%c64, %c0_11], %18 {strides = array<i32>} : memref<72x384xf32, #tpu.memory_space<vmem>>, vector<8x384xf32>,
    %c0_12 = arith.constant 0 : index
    %c0_13 = arith.constant 0 : index
    %20 = vector.load %arg2[%c0_12, %c0_13] : memref<8x72xf32, #tpu.memory_space<vmem>>, vector<8x72xf32>
    %c0_14 = arith.constant 0 : index
    %c0_15 = arith.constant 0 : index
    %21 = vector.load %arg10[%c0_14, %c0_15] : memref<72x384xf32, #tpu.memory_space<vmem>>, vector<72x384xf32>
    %cst = arith.constant dense<0.000000e+00> : vector<8x384xf32>
    %22 = tpu.matmul %20, %21, %cst {dimension_numbers = #tpu.dot_dimension_numbers<[1], [0], [0], [1], [0, 0, 1, 1], [], []>} : vector<8x72xf32>, vector<72x384xf32>, vector<8x384xf32> -> vector<8x384xf32>
    %c0_16 = arith.constant 0 : index
    %c0_17 = arith.constant 0 : index
    %23 = vector.load %arg3[%c0_16, %c0_17] : memref<8x1xf32, #tpu.memory_space<vmem>>, vector<8x1xf32>
    %24 = vector.broadcast %23 : vector<8x1xf32> to vector<8x384xf32>
    %25 = arith.addf %22, %24 : vector<8x384xf32>
    %cst_18 = arith.constant 0.000000e+00 : f32
    %26 = vector.broadcast %cst_18 : f32 to vector<8x384xf32>
    %27 = arith.maximumf %25, %26 : vector<8x384xf32>
    %c0_19 = arith.constant 0 : index
    %c0_20 = arith.constant 0 : index
    %28 = vector.load %arg6[%c0_19, %c0_20] : memref<1x384xf32, #tpu.memory_space<vmem>>, vector<1x384xf32>
    %29 = vector.broadcast %28 : vector<1x384xf32> to vector<8x384xf32>
    %30 = arith.mulf %27, %29 : vector<8x384xf32>
    %cst_21 = arith.constant 0.000000e+00 : f32
    %31 = vector.broadcast %cst_21 : f32 to vector<8x640xf32>
    %c0_22 = arith.constant 0 : index
    %c0_23 = arith.constant 0 : index
    %32 = vector.load %arg11[%c0_22, %c0_23] : memref<8x640xf32, #tpu.memory_space<vmem>>, vector<8x640xf32>
    tpu.vector_store %arg11[%c0_22, %c0_23], %31 {strides = array<i32>} : memref<8x640xf32, #tpu.memory_space<vmem>>, vector<8x640xf32>,
    %c0_24 = arith.constant 0 : index
    %c128 = arith.constant 128 : index
    %33 = vector.load %arg11[%c0_24, %c128] : memref<8x640xf32, #tpu.memory_space<vmem>>, vector<8x384xf32>
    tpu.vector_store %arg11[%c0_24, %c128], %30 {strides = array<i32>} : memref<8x640xf32, #tpu.memory_space<vmem>>, vector<8x384xf32>,
    %c0_25 = arith.constant 0 : index
    %c0_26 = arith.constant 0 : index
    %34 = vector.load %arg11[%c0_25, %c0_26] : memref<8x640xf32, #tpu.memory_space<vmem>>, vector<8x640xf32>
    %35 = vector.extract_strided_slice %34 {offsets = [0, 109], sizes = [8, 384], strides = [1, 1]} : vector<8x640xf32> to vector<8x384xf32>
    %c0_27 = arith.constant 0 : index
    %c0_28 = arith.constant 0 : index
    %36 = vector.load %arg10[%c0_27, %c0_28] : memref<72x384xf32, #tpu.memory_space<vmem>>, vector<8x384xf32>
    tpu.vector_store %arg10[%c0_27, %c0_28], %35 {strides = array<i32>} : memref<72x384xf32, #tpu.memory_space<vmem>>, vector<8x384xf32>,
    %37 = vector.extract_strided_slice %34 {offsets = [0, 110], sizes = [8, 384], strides = [1, 1]} : vector<8x640xf32> to vector<8x384xf32>
    %c8_29 = arith.constant 8 : index
    %c0_30 = arith.constant 0 : index
    %38 = vector.load %arg10[%c8_29, %c0_30] : memref<72x384xf32, #tpu.memory_space<vmem>>, vector<8x384xf32>
    tpu.vector_store %arg10[%c8_29, %c0_30], %37 {strides = array<i32>} : memref<72x384xf32, #tpu.memory_space<vmem>>, vector<8x384xf32>,
    %39 = vector.extract_strided_slice %34 {offsets = [0, 111], sizes = [8, 384], strides = [1, 1]} : vector<8x640xf32> to vector<8x384xf32>
    %c16_31 = arith.constant 16 : index
    %c0_32 = arith.constant 0 : index
    %40 = vector.load %arg10[%c16_31, %c0_32] : memref<72x384xf32, #tpu.memory_space<vmem>>, vector<8x384xf32>
    tpu.vector_store %arg10[%c16_31, %c0_32], %39 {strides = array<i32>} : memref<72x384xf32, #tpu.memory_space<vmem>>, vector<8x384xf32>,
    %41 = vector.extract_strided_slice %34 {offsets = [0, 127], sizes = [8, 384], strides = [1, 1]} : vector<8x640xf32> to vector<8x384xf32>
    %c24_33 = arith.constant 24 : index
    %c0_34 = arith.constant 0 : index
    %42 = vector.load %arg10[%c24_33, %c0_34] : memref<72x384xf32, #tpu.memory_space<vmem>>, vector<8x384xf32>
    tpu.vector_store %arg10[%c24_33, %c0_34], %41 {strides = array<i32>} : memref<72x384xf32, #tpu.memory_space<vmem>>, vector<8x384xf32>,
    %43 = vector.extract_strided_slice %34 {offsets = [0, 128], sizes = [8, 384], strides = [1, 1]} : vector<8x640xf32> to vector<8x384xf32>
    %c32_35 = arith.constant 32 : index
    %c0_36 = arith.constant 0 : index
    %44 = vector.load %arg10[%c32_35, %c0_36] : memref<72x384xf32, #tpu.memory_space<vmem>>, vector<8x384xf32>
    tpu.vector_store %arg10[%c32_35, %c0_36], %43 {strides = array<i32>} : memref<72x384xf32, #tpu.memory_space<vmem>>, vector<8x384xf32>,
    %45 = vector.extract_strided_slice %34 {offsets = [0, 129], sizes = [8, 384], strides = [1, 1]} : vector<8x640xf32> to vector<8x384xf32>
    %c40_37 = arith.constant 40 : index
    %c0_38 = arith.constant 0 : index
    %46 = vector.load %arg10[%c40_37, %c0_38] : memref<72x384xf32, #tpu.memory_space<vmem>>, vector<8x384xf32>
    tpu.vector_store %arg10[%c40_37, %c0_38], %45 {strides = array<i32>} : memref<72x384xf32, #tpu.memory_space<vmem>>, vector<8x384xf32>,
    %47 = vector.extract_strided_slice %34 {offsets = [0, 145], sizes = [8, 384], strides = [1, 1]} : vector<8x640xf32> to vector<8x384xf32>
    %c48_39 = arith.constant 48 : index
    %c0_40 = arith.constant 0 : index
    %48 = vector.load %arg10[%c48_39, %c0_40] : memref<72x384xf32, #tpu.memory_space<vmem>>, vector<8x384xf32>
    tpu.vector_store %arg10[%c48_39, %c0_40], %47 {strides = array<i32>} : memref<72x384xf32, #tpu.memory_space<vmem>>, vector<8x384xf32>,
    %49 = vector.extract_strided_slice %34 {offsets = [0, 146], sizes = [8, 384], strides = [1, 1]} : vector<8x640xf32> to vector<8x384xf32>
    %c56_41 = arith.constant 56 : index
    %c0_42 = arith.constant 0 : index
    %50 = vector.load %arg10[%c56_41, %c0_42] : memref<72x384xf32, #tpu.memory_space<vmem>>, vector<8x384xf32>
    tpu.vector_store %arg10[%c56_41, %c0_42], %49 {strides = array<i32>} : memref<72x384xf32, #tpu.memory_space<vmem>>, vector<8x384xf32>,
    %51 = vector.extract_strided_slice %34 {offsets = [0, 147], sizes = [8, 384], strides = [1, 1]} : vector<8x640xf32> to vector<8x384xf32>
    %c64_43 = arith.constant 64 : index
    %c0_44 = arith.constant 0 : index
    %52 = vector.load %arg10[%c64_43, %c0_44] : memref<72x384xf32, #tpu.memory_space<vmem>>, vector<8x384xf32>
    tpu.vector_store %arg10[%c64_43, %c0_44], %51 {strides = array<i32>} : memref<72x384xf32, #tpu.memory_space<vmem>>, vector<8x384xf32>,
    %c0_45 = arith.constant 0 : index
    %c0_46 = arith.constant 0 : index
    %53 = vector.load %arg4[%c0_45, %c0_46] : memref<8x72xf32, #tpu.memory_space<vmem>>, vector<8x72xf32>
    %c0_47 = arith.constant 0 : index
    %c0_48 = arith.constant 0 : index
    %54 = vector.load %arg10[%c0_47, %c0_48] : memref<72x384xf32, #tpu.memory_space<vmem>>, vector<72x384xf32>
    %cst_49 = arith.constant dense<0.000000e+00> : vector<8x384xf32>
    %55 = tpu.matmul %53, %54, %cst_49 {dimension_numbers = #tpu.dot_dimension_numbers<[1], [0], [0], [1], [0, 0, 1, 1], [], []>} : vector<8x72xf32>, vector<72x384xf32>, vector<8x384xf32> -> vector<8x384xf32>
    %c0_50 = arith.constant 0 : index
    %c0_51 = arith.constant 0 : index
    %56 = vector.load %arg5[%c0_50, %c0_51] : memref<8x1xf32, #tpu.memory_space<vmem>>, vector<8x1xf32>
    %57 = vector.broadcast %56 : vector<8x1xf32> to vector<8x384xf32>
    %58 = arith.addf %55, %57 : vector<8x384xf32>
    %c0_52 = arith.constant 0 : index
    %c0_53 = arith.constant 0 : index
    %59 = vector.load %arg7[%c0_52, %c0_53] : memref<8x8xf32, #tpu.memory_space<vmem>>, vector<8x8xf32>
    %60 = vector.extract_strided_slice %1 {offsets = [0, 128], sizes = [8, 384], strides = [1, 1]} : vector<8x640xf32> to vector<8x384xf32>
    %cst_54 = arith.constant dense<0.000000e+00> : vector<8x384xf32>
    %61 = tpu.matmul %59, %60, %cst_54 {dimension_numbers = #tpu.dot_dimension_numbers<[1], [0], [0], [1], [0, 0, 1, 1], [], []>} : vector<8x8xf32>, vector<8x384xf32>, vector<8x384xf32> -> vector<8x384xf32>
    %c0_55 = arith.constant 0 : index
    %c0_56 = arith.constant 0 : index
    %62 = vector.load %arg8[%c0_55, %c0_56] : memref<8x1xf32, #tpu.memory_space<vmem>>, vector<8x1xf32>
    %63 = vector.broadcast %62 : vector<8x1xf32> to vector<8x384xf32>
    %64 = arith.addf %61, %63 : vector<8x384xf32>
    %65 = arith.addf %58, %64 : vector<8x384xf32>
    %cst_57 = arith.constant 0.000000e+00 : f32
    %66 = vector.broadcast %cst_57 : f32 to vector<8x384xf32>
    %67 = arith.maximumf %65, %66 : vector<8x384xf32>
    %c0_58 = arith.constant 0 : index
    %c0_59 = arith.constant 0 : index
    %c0_60 = arith.constant 0 : index
    %68 = vector.load %arg9[%c0_58, %c0_59, %c0_60] : memref<1x8x384xf32, #tpu.memory_space<vmem>>, vector<1x8x384xf32>
    %69 = vector.shape_cast %68 : vector<1x8x384xf32> to vector<8x384xf32>
    %70 = vector.shape_cast %67 : vector<8x384xf32> to vector<1x8x384xf32>
    tpu.vector_store %arg9[%c0_58, %c0_59, %c0_60], %70 {strides = array<i32>} : memref<1x8x384xf32, #tpu.memory_space<vmem>>, vector<1x8x384xf32>,
    return
  }
  func.func @transform_0(%arg0: i32) -> (i32, i32, i32) {
    %c0_i32 = arith.constant 0 : i32
    %c0_i32_0 = arith.constant 0 : i32
    %c0_i32_1 = arith.constant 0 : i32
    return %arg0, %c0_i32, %c0_i32_0 : i32, i32, i32
  }
  func.func @transform_1(%arg0: i32) -> (i32, i32) {
    %c0_i32 = arith.constant 0 : i32
    %c0_i32_0 = arith.constant 0 : i32
    %c0_i32_1 = arith.constant 0 : i32
    return %c0_i32, %c0_i32_0 : i32, i32
  }
  func.func @transform_2(%arg0: i32) -> (i32, i32) {
    %c0_i32 = arith.constant 0 : i32
    %c0_i32_0 = arith.constant 0 : i32
    %c0_i32_1 = arith.constant 0 : i32
    return %c0_i32, %c0_i32_0 : i32, i32
  }
  func.func @transform_3(%arg0: i32) -> (i32, i32) {
    %c0_i32 = arith.constant 0 : i32
    %c0_i32_0 = arith.constant 0 : i32
    %c0_i32_1 = arith.constant 0 : i32
    return %c0_i32, %c0_i32_0 : i32, i32
  }
  func.func @transform_4(%arg0: i32) -> (i32, i32) {
    %c0_i32 = arith.constant 0 : i32
    %c0_i32_0 = arith.constant 0 : i32
    %c0_i32_1 = arith.constant 0 : i32
    return %c0_i32, %c0_i32_0 : i32, i32
  }
  func.func @transform_5(%arg0: i32) -> (i32, i32) {
    %c0_i32 = arith.constant 0 : i32
    %c0_i32_0 = arith.constant 0 : i32
    %c0_i32_1 = arith.constant 0 : i32
    return %c0_i32, %c0_i32_0 : i32, i32
  }
  func.func @transform_6(%arg0: i32) -> (i32, i32) {
    %c0_i32 = arith.constant 0 : i32
    %c0_i32_0 = arith.constant 0 : i32
    %c0_i32_1 = arith.constant 0 : i32
    return %c0_i32, %c0_i32_0 : i32, i32
  }
  func.func @transform_7(%arg0: i32) -> (i32, i32) {
    %c0_i32 = arith.constant 0 : i32
    %c0_i32_0 = arith.constant 0 : i32
    %c0_i32_1 = arith.constant 0 : i32
    return %c0_i32, %c0_i32_0 : i32, i32
  }
  func.func @transform_8(%arg0: i32) -> (i32, i32, i32) {
    %c0_i32 = arith.constant 0 : i32
    %c0_i32_0 = arith.constant 0 : i32
    %c0_i32_1 = arith.constant 0 : i32
    return %arg0, %c0_i32, %c0_i32_0 : i32, i32, i32
  }
}

</mosaic_0001>

<bundles_post_ra>
// kernel: basic_block_forward.1
= control target key start
LH: loop header
LB: loop body
LE: loop exit
PB: predicated region body
PF: predicated region fallthrough
CT: control target
= control target key end

     0   :  { %s1387_s27 = smov 0   ;;  %s1652_s0 = inlined_call_operand.vmem [shape: f32[2,8,640], index: 0, kind: input, shape index: {}]   ;;  %s1653_s1 = inlined_call_operand.vmem [shape: f32[8,72], index: 1, kind: input, shape index: {}]   ;;  %s1654_s2 = inlined_call_operand.vmem [shape: f32[8,1], index: 2, kind: input, shape index: {}]   ;;  %s1655_s3 = inlined_call_operand.vmem [shape: f32[8,72], index: 3, kind: input, shape index: {}]   ;;  %s1656_s4 = inlined_call_operand.vmem [shape: f32[8,1], index: 4, kind: input, shape index: {}]   ;;  %s1657_s5 = inlined_call_operand.vmem [shape: f32[1,384], index: 5, kind: input, shape index: {}]   ;;  %s1658_s6 = inlined_call_operand.vmem [shape: f32[8,8], index: 6, kind: input, shape index: {}]   ;;  %s1659_s7 = inlined_call_operand.vmem [shape: f32[8,1], index: 7, kind: input, shape index: {}]   ;;  %s1660_s8 = inlined_call_operand.vmem [shape: f32[2,8,384], index: 8, kind: output, shape index: {}]  }
   0x1 LB: > { %s1216_s28 = sadd.s32 4294967295, %s1329_s27   ;;  %p1220_p0 = scmp.ge.s32.totalorder %s1329_s27, 1  ;;  %s1329_s27 = sphi %s1387_s27, %s18_s27  }
   0x2   : > { %p262_p1 = scmp.lt.s32.totalorder %s1329_s27, 3 }
   0x4   : > { %p263_p2 = pnand %p1220_p0, %p262_p1 }
   0x5   : > { %p296_p3 = scmp.lt.s32.totalorder (!%p263_p2), %s1216_s28, 1  ;;  %s1332_s11 = smov (!%p263_p2), 109  }
   0x6   : > { %266 = sbr.rel (%p263_p2) target bundleno = 767 (0x2ff), region = 52  ;;  %s1333_s12 = smov (!%p263_p2), 110  }
   0x7   : > { %s1334_s13 = smov (!%p263_p2), 111   ;;  %s1335_s14 = smov (!%p263_p2), 127  }
   0x8   : > { %s1336_s15 = smov (!%p263_p2), 1   ;;  %s1337_s16 = smov (!%p263_p2), 17  }
   0x9   : > { %s1338_s17 = smov (!%p263_p2), 18   ;;  %s1340_s18 = smov (!%p263_p2), 19  }
   0xb   : > { %s1662_s28 = smov (!%p296_p3, %s1216_s28), 1  ;;  %v1331_v2 = vmov 0.0   ;;  %vm1339_vm0 = vmmov 0   ;;  %v1341_v6 = vmov 0   ;;  %v491_v7 = vld [vmem:[%s1654_s2] sm:$0xff]  ;;  %vm453_vm1 = vcmask 891904  }
   0xc   : > { %s1300_s29 = smul.u32 40, %s1662_s28  ;;  %1253 = vmatprep.subr.mxu1 %v1331_v2  ;;  %565 = vmatprep.mubr.f32.mxu0 %v1331_v2  ;;  %vm435_vm2 = vcmask 900096   ;;  %vm417_vm3 = vcmask 908288   ;;  %vm399_vm4 = vcmask 1039360   ;;  %vm377_vm5 = vcmask 7168   ;;  %v463_v60 = vld [vmem:[%s1653_s1] sm:$0xff] }
   0xd   : > { %1271 = vmatprep.mubr.msk.f32.mxu1 %vm1339_vm0, %v1331_v2  ;;  %1321 = vset.pattern.permute.xlu0 %v1341_v6  ;;  %vm359_vm6 = vcmask 138240   ;;  %vm341_vm7 = vcmask 146432   ;;  %vm323_vm8 = vcmask 154624   ;;  %vm497_vm9 = vcmask 588800  }
   0xe   : > { %s1401_s10 = scalar_lea.vmem %s1652_s0, %s1300_s29  ;;  %1322 = vset.pattern.permute.xlu1 %v1341_v6  ;;  %vm1007_vm10 = vcmask 64512  }
   0xf   : > { %v1404_v0 = vld [vmem:[%s1401_s10 + $0x10] sm:$0xff]  ;;  %v1407_v1 = vld [vmem:[%s1401_s10 + $0x8] sm:$0xff]  ;;  %v1416_v3 = vld [vmem:[%s1401_s10 + $0x18] sm:$0xff] }
  0x10   : > { %447 = vrot.lane.b32.xlu0 %v1404_v0, %s1332_s11  ;;  %445 = vrot.lane.b32.xlu1 %v1407_v1, %s1332_s11  ;;  %v310_v4 = vld [vmem:[%s1401_s10 + $0x20] sm:$0xff] }
  0x11   : > { %v306_v5 = vld [vmem:[%s1401_s10] sm:$0xff] }
  0x14   : > { %449 = vrot.lane.b32.xlu0 %v1416_v3, %s1332_s11  ;;  %429 = vrot.lane.b32.xlu1 %v1404_v0, %s1333_s12 }
  0x18   : > { %431 = vrot.lane.b32.xlu0 %v1416_v3, %s1333_s12  ;;  %427 = vrot.lane.b32.xlu1 %v1407_v1, %s1333_s12 }
  0x1c   : > { %451 = vrot.lane.b32.xlu0 %v310_v4, %s1332_s11  ;;  %411 = vrot.lane.b32.xlu1 %v1404_v0, %s1334_s13 }
  0x20   : > { %413 = vrot.lane.b32.xlu0 %v1416_v3, %s1334_s13  ;;  %409 = vrot.lane.b32.xlu1 %v1407_v1, %s1334_s13 }
  0x24   : > { %433 = vrot.lane.b32.xlu0 %v310_v4, %s1333_s12  ;;  %393 = vrot.lane.b32.xlu1 %v1404_v0, %s1335_s14 }
  0x28   : > { %395 = vrot.lane.b32.xlu0 %v1416_v3, %s1335_s14  ;;  %391 = vrot.lane.b32.xlu1 %v1407_v1, %s1335_s14 }
  0x2c   : > { %415 = vrot.lane.b32.xlu0 %v310_v4, %s1334_s13  ;;  %397 = vrot.lane.b32.xlu1 %v310_v4, %s1335_s14 }
  0x30   : > { %371 = vrot.lane.b32.xlu0 %v1407_v1, %s1336_s15  ;;  %373 = vrot.lane.b32.xlu1 %v1404_v0, %s1336_s15 }
  0x34   : > { %353 = vrot.lane.b32.xlu1 %v1407_v1, %s1337_s16  ;;  %369 = vrot.lane.b32.xlu0 %v306_v5, %s1336_s15 }
  0x38   : > { %351 = vrot.lane.b32.xlu1 %v306_v5, %s1337_s16  ;;  %355 = vrot.lane.b32.xlu0 %v1404_v0, %s1337_s16 }
  0x3c   : > { %335 = vrot.lane.b32.xlu1 %v1407_v1, %s1338_s17  ;;  %375 = vrot.lane.b32.xlu0 %v1416_v3, %s1336_s15 }
  0x40   : > { %333 = vrot.lane.b32.xlu1 %v306_v5, %s1338_s17  ;;  %337 = vrot.lane.b32.xlu0 %v1404_v0, %s1338_s17 }
  0x44   : > { %317 = vrot.lane.b32.xlu1 %v1407_v1, %s1340_s18  ;;  %357 = vrot.lane.b32.xlu0 %v1416_v3, %s1337_s16 }
  0x48   : > { %315 = vrot.lane.b32.xlu1 %v306_v5, %s1340_s18  ;;  %319 = vrot.lane.b32.xlu0 %v1404_v0, %s1340_s18  ;;  %v647_v5 = vlaneseq }
  0x4a   : > { %v648_v6 = vshrl.u32 %v647_v5, 7 }
  0x4c   : > { %321 = vrot.lane.b32.xlu1 %v1416_v3, %s1340_s18  ;;  %339 = vrot.lane.b32.xlu0 %v1416_v3, %s1338_s17 }
  0x50   : > { %494 = vperm.xlu0 %1321, %v491_v7   ;;  %760 = vrot.lane.b32.xlu1 %v1331_v2, %s1335_s14  ;;  %v657_v7 = vsub.s32 2, %v648_v6 }
  0x54   : > { %811 = vrot.lane.b32.xlu0 %v1331_v2, %s1332_s11  ;;  %716 = vrot.lane.b32.xlu1 %v1331_v2, %s1337_s16 }
  0x58   : > { %794 = vrot.lane.b32.xlu0 %v1331_v2, %s1333_s12  ;;  %699 = vrot.lane.b32.xlu1 %v1331_v2, %s1338_s17 }
  0x5c   : > { %777 = vrot.lane.b32.xlu0 %v1331_v2, %s1334_s13 }
  0x60   : > { %733 = vrot.lane.b32.xlu0 %v1331_v2, %s1336_s15 }
  0x82   : > { %v448_v8 = vpop.permute.xlu0 %447  ;;  %v446_v9 = vpop.permute.xlu1 %445 }
  0x83   : > { %v454_v13 = vsel %vm453_vm1, %v446_v9, %v448_v8 }
  0x86   : > { %v450_v10 = vpop.permute.xlu0 %449  ;;  %v430_v11 = vpop.permute.xlu1 %429 }
  0x87   : > { %v455_v12 = vsel %vm453_vm1, %v448_v8, %v450_v10  ;;  %v645_v8 = vld [vmem:[%s1657_s5] sm:$0x7] }
  0x88   : > { %515 = vmatprep.subr.mxu0 %v455_v12  ;;  %v649_v12 = vsub.s32 0, %v648_v6 }
  0x89   : > { %516 = vmatpush1.msra.mxu0 %v454_v13  ;;  %v658_v13 = vrot.slane %v645_v8, %v657_v7 }
  0x8a   : > { %v432_v14 = vpop.permute.xlu0 %431  ;;  %v428_v15 = vpop.permute.xlu1 %427 }
  0x8b   : > { %v437_v16 = vsel %vm435_vm2, %v430_v11, %v432_v14  ;;  %v436_v17 = vsel %vm435_vm2, %v428_v15, %v430_v11 }
  0x8c   : > { %517 = vmatprep.subr.mxu0 %v437_v16 }
  0x8d   : > { %518 = vmatpush1.msra.mxu0 %v436_v17 }
  0x8e   : > { %v452_v18 = vpop.permute.xlu0 %451  ;;  %v412_v19 = vpop.permute.xlu1 %411 }
  0x8f   : > { %v456_v20 = vsel %vm453_vm1, %v450_v10, %v452_v18  ;;  %v650_v18 = vrot.slane %v645_v8, %v649_v12 }
  0x90   : > { %1254 = vmatpush3.msra.mxu1 %v456_v20 }
  0x91   : > { %1255 = vmatprep.subr.mxu1 %v1331_v2 }
  0x92   : > { %v414_v21 = vpop.permute.xlu0 %413  ;;  %v410_v22 = vpop.permute.xlu1 %409 }
  0x93   : > { %v419_v23 = vsel %vm417_vm3, %v412_v19, %v414_v21  ;;  %v418_v24 = vsel %vm417_vm3, %v410_v22, %v412_v19 }
  0x94   : > { %519 = vmatprep.subr.mxu0 %v419_v23  ;;  %v653_v23 = vsub.s32 1, %v648_v6 }
  0x95   : > { %520 = vmatpush1.msra.mxu0 %v418_v24 }
  0x96   : > { %v434_v25 = vpop.permute.xlu0 %433  ;;  %v394_v26 = vpop.permute.xlu1 %393 }
  0x97   : > { %v438_v27 = vsel %vm435_vm2, %v432_v14, %v434_v25  ;;  %v654_v25 = vrot.slane %v645_v8, %v653_v23  ;;  %v822_v23 = vld [vmem:[%s1655_s3] sm:$0xff] }
  0x98   : > { %1256 = vmatpush3.msra.mxu1 %v438_v27 }
  0x99   : > { %1257 = vmatprep.subr.mxu1 %v1331_v2 }
  0x9a   : > { %v396_v28 = vpop.permute.xlu0 %395  ;;  %v392_v29 = vpop.permute.xlu1 %391 }
  0x9b   : > { %v401_v30 = vsel %vm399_vm4, %v394_v26, %v396_v28  ;;  %v400_v31 = vsel %vm399_vm4, %v392_v29, %v394_v26  ;;  %v1001_v29 = vld [vmem:[%s1659_s7] sm:$0xff] }
  0x9c   : > { %521 = vmatprep.subr.mxu0 %v401_v30 }
  0x9d   : > { %522 = vmatpush1.msra.mxu0 %v400_v31 }
  0x9e   : > { %v416_v32 = vpop.permute.xlu0 %415  ;;  %v398_v33 = vpop.permute.xlu1 %397  ;;  %523 = vmatprep.subr.mxu0 %v1404_v0 }
  0x9f   : > { %v420_v34 = vsel %vm417_vm3, %v414_v21, %v416_v32  ;;  %524 = vmatpush1.msra.mxu0 %v1407_v1  ;;  %v402_v35 = vsel %vm399_vm4, %v396_v28, %v398_v33  ;;  %v850_v28 = vld [vmem:[%s1656_s4] sm:$0xff] }
  0xa0   : > { %1258 = vmatpush3.msra.mxu1 %v420_v34 }
  0xa1   : > { %1259 = vmatprep.subr.mxu1 %v1331_v2 }
  0xa2   : > { %v372_v36 = vpop.permute.xlu0 %371  ;;  %1260 = vmatpush3.msra.mxu1 %v402_v35  ;;  %v374_v37 = vpop.permute.xlu1 %373 }
  0xa3   : > { %v379_v38 = vsel %vm377_vm5, %v372_v36, %v374_v37  ;;  %1261 = vmatprep.subr.mxu1 %v1331_v2 }
  0xa4   : > { %525 = vmatprep.subr.mxu0 %v379_v38  ;;  %1262 = vmatpush3.msra.mxu1 %v1416_v3 }
  0xa5   : > { %1263 = vmatprep.subr.mxu1 %v1331_v2 }
  0xa6   : > { %v354_v39 = vpop.permute.xlu1 %353  ;;  %v370_v40 = vpop.permute.xlu0 %369 }
  0xa7   : > { %v378_v41 = vsel %vm377_vm5, %v370_v40, %v372_v36 }
  0xa8   : > { %526 = vmatpush1.msra.mxu0 %v378_v41 }
  0xaa   : > { %v352_v42 = vpop.permute.xlu1 %351  ;;  %v356_v43 = vpop.permute.xlu0 %355 }
  0xab   : > { %v361_v44 = vsel %vm359_vm6, %v354_v39, %v356_v43  ;;  %v360_v45 = vsel %vm359_vm6, %v352_v42, %v354_v39 }
  0xac   : > { %527 = vmatprep.subr.mxu0 %v361_v44 }
  0xad   : > { %528 = vmatpush1.msra.mxu0 %v360_v45 }
  0xae   : > { %v336_v46 = vpop.permute.xlu1 %335  ;;  %v376_v47 = vpop.permute.xlu0 %375 }
  0xaf   : > { %v380_v48 = vsel %vm377_vm5, %v374_v37, %v376_v47 }
  0xb0   : > { %1264 = vmatpush3.msra.mxu1 %v380_v48 }
  0xb1   : > { %1265 = vmatprep.subr.mxu1 %v1331_v2 }
  0xb2   : > { %v334_v49 = vpop.permute.xlu1 %333  ;;  %v338_v50 = vpop.permute.xlu0 %337 }
  0xb3   : > { %v343_v51 = vsel %vm341_vm7, %v336_v46, %v338_v50  ;;  %v342_v52 = vsel %vm341_vm7, %v334_v49, %v336_v46 }
  0xb4   : > { %529 = vmatprep.subr.mxu0 %v343_v51 }
  0xb5   : > { %530 = vmatpush1.msra.mxu0 %v342_v52 }
  0xb6   : > { %v318_v53 = vpop.permute.xlu1 %317  ;;  %v358_v54 = vpop.permute.xlu0 %357 }
  0xb7   : > { %v362_v55 = vsel %vm359_vm6, %v356_v43, %v358_v54 }
  0xb8   : > { %1266 = vmatpush3.msra.mxu1 %v362_v55 }
  0xb9   : > { %1267 = vmatprep.subr.mxu1 %v1331_v2 }
  0xba   : > { %v316_v56 = vpop.permute.xlu1 %315  ;;  %v320_v57 = vpop.permute.xlu0 %319 }
  0xbb   : > { %v325_v58 = vsel %vm323_vm8, %v318_v53, %v320_v57  ;;  %v324_v59 = vsel %vm323_vm8, %v316_v56, %v318_v53 }
  0xbc   : > { %531 = vmatprep.subr.mxu0 %v325_v58 }
  0xbd   : > { %532 = vmatpush1.msra.mxu0 %v324_v59 }
  0xbe   : > { %v322_v61 = vpop.permute.xlu1 %321  ;;  %v340_v62 = vpop.permute.xlu0 %339  ;;  %1223 = vmatmul.mubr.msk.f32.vlgmr.msra.gmra.mxu0 %vm497_vm9, %v463_v60 }
  0xbf   : > { %v344_v63 = vsel %vm341_vm7, %v338_v50, %v340_v62  ;;  %923 = vmatprep.mubr.f32.mxu0 %v1331_v2  ;;  %v326_v4 = vsel %vm323_vm8, %v320_v57, %v322_v61 }
  0xc0   : > { %1268 = vmatpush3.msra.mxu1 %v344_v63 }
  0xc1   : > { %1269 = vmatprep.subr.mxu1 %v1331_v2 }
  0xc2   : > { %1270 = vmatpush3.msra.mxu1 %v326_v4  ;;  %v761_v31 = vpop.permute.xlu1 %760 }
  0xc3   : > { %1272 = vmatmul.mubr.msk.f32.vlgmr.msra.gmra.mxu1 %vm497_vm9, %v463_v60  ;;  %1274 = vmatprep.subr.mxu1 %v1331_v2 }
  0xc4   : > { %1292 = vmatprep.mubr.msk.f32.mxu1 %vm1339_vm0, %v1331_v2 }
  0xc6   : > { %v1590_v33 = vpop.permute.xlu1 %716 }
  0xca   : > { %v1592_v35 = vpop.permute.xlu1 %699 }
  0xcb   : > { %v495_v9 = vpop.permute.xlu0 %494 }
  0xcf   : > { %v812_v30 = vpop.permute.xlu0 %811 }
  0xd3   : > { %v795_v32 = vpop.permute.xlu0 %794 }
  0xd7   : > { %v778_v34 = vpop.permute.xlu0 %777 }
  0xdb   : > { %v734_v36 = vpop.permute.xlu0 %733 }
 0x17e   : > { %v567_v10 = vpop.f32.mrf.mxu0 }
 0x17f   : > { %v568_v14 = vadd.f32 %v567_v10, %v495_v9 }
 0x180   : > { %v569_v22 = vpop.f32.mrf.mxu0 }
 0x181   : > { %v642_v19 = vmax.f32 %v568_v14, 0.0  ;;  %v570_v24 = vadd.f32 %v569_v22, %v495_v9 }
 0x183   : > { %v638_v11 = vpop.f32.mrf.mxu1  ;;  %v1540_v21 = vmul.f32 %v650_v18, %v642_v19  ;;  %v643_v26 = vmax.f32 %v570_v24, 0.0 }
 0x184   : > { %v639_v15 = vadd.f32 %v638_v11, %v495_v9 }
 0x185   : > { %v1273_v16 = vpop.f32.mrf.mxu1  ;;  %v1558_v27 = vmul.f32 %v654_v25, %v643_v26  ;;  %v1000_v26 = vld [vmem:[%s1658_s6] sm:$0xff] }
 0x186   : > { %v644_v17 = vmax.f32 %v639_v15, 0.0 }
 0x188   : > { %v664_v20 = vmul.f32 %v658_v13, %v644_v17 }
 0x18a   : > { %792 = vrot.lane.b32.xlu0 %v664_v20, %s1333_s12  ;;  %809 = vrot.lane.b32.xlu1 %v664_v20, %s1332_s11 }
 0x18e   : > { %775 = vrot.lane.b32.xlu0 %v664_v20, %s1334_s13  ;;  %788 = vrot.lane.b32.xlu1 %v1540_v21, %s1333_s12 }
 0x192   : > { %758 = vrot.lane.b32.xlu0 %v664_v20, %s1335_s14  ;;  %771 = vrot.lane.b32.xlu1 %v1540_v21, %s1334_s13 }
 0x196   : > { %739 = vrot.lane.b32.xlu0 %v664_v20, %s1336_s15  ;;  %754 = vrot.lane.b32.xlu1 %v1540_v21, %s1335_s14 }
 0x19a   : > { %722 = vrot.lane.b32.xlu0 %v664_v20, %s1337_s16  ;;  %718 = vrot.lane.b32.xlu1 %v1540_v21, %s1337_s16 }
 0x19e   : > { %701 = vrot.lane.b32.xlu1 %v1540_v21, %s1338_s17  ;;  %805 = vrot.lane.b32.xlu0 %v1540_v21, %s1332_s11 }
 0x1a2   : > { %807 = vrot.lane.b32.xlu1 %v1558_v27, %s1332_s11  ;;  %735 = vrot.lane.b32.xlu0 %v1540_v21, %s1336_s15 }
 0x1a6   : > { %790 = vrot.lane.b32.xlu1 %v1558_v27, %s1333_s12  ;;  %720 = vrot.lane.b32.xlu0 %v1558_v27, %s1337_s16 }
 0x1aa   : > { %773 = vrot.lane.b32.xlu1 %v1558_v27, %s1334_s13  ;;  %703 = vrot.lane.b32.xlu0 %v1558_v27, %s1338_s17  ;;  %s1301_s13 = smul.u32 24, %s1662_s28 }
 0x1ac   : > { %s305_s16 = scalar_lea.vmem %s1660_s8, %s1301_s13 }
 0x1ae   : > { %756 = vrot.lane.b32.xlu1 %v1558_v27, %s1335_s14  ;;  %686 = vrot.lane.b32.xlu0 %v1558_v27, %s1340_s18 }
 0x1b2   : > { %737 = vrot.lane.b32.xlu1 %v1558_v27, %s1336_s15  ;;  %705 = vrot.lane.b32.xlu0 %v664_v20, %s1338_s17 }
 0x1b6   : > { %684 = vrot.lane.b32.xlu1 %v1540_v21, %s1340_s18  ;;  %853 = vperm.xlu0 %1321, %v850_v28  }
 0x1ba   : > { %682 = vrot.lane.b32.xlu1 %v1331_v2, %s1340_s18 }
 0x1be   : > { %688 = vrot.lane.b32.xlu1 %v664_v20, %s1340_s18 }
 0x1c2   : > { %1004 = vperm.xlu1 %1322, %v1001_v29  }
 0x1fc   : > { %v810_v37 = vpop.permute.xlu1 %809  ;;  %v793_v38 = vpop.permute.xlu0 %792 }
 0x1fd   : > { %v815_v39 = vsel %vm453_vm1, %v810_v37, %v812_v30  ;;  %v798_v40 = vsel %vm435_vm2, %v793_v38, %v795_v32 }
 0x1fe   : > { %1275 = vmatpush3.msra.mxu1 %v815_v39 }
 0x1ff   : > { %1276 = vmatprep.subr.mxu1 %v1331_v2 }
 0x200   : > { %v789_v41 = vpop.permute.xlu1 %788  ;;  %1277 = vmatpush3.msra.mxu1 %v798_v40  ;;  %v776_v42 = vpop.permute.xlu0 %775 }
 0x201   : > { %v781_v43 = vsel %vm417_vm3, %v776_v42, %v778_v34  ;;  %1278 = vmatprep.subr.mxu1 %v1331_v2 }
 0x202   : > { %1279 = vmatpush3.msra.mxu1 %v781_v43 }
 0x203   : > { %1280 = vmatprep.subr.mxu1 %v1331_v2 }
 0x204   : > { %v772_v44 = vpop.permute.xlu1 %771  ;;  %v759_v45 = vpop.permute.xlu0 %758 }
 0x205   : > { %v764_v46 = vsel %vm399_vm4, %v759_v45, %v761_v31 }
 0x206   : > { %1281 = vmatpush3.msra.mxu1 %v764_v46 }
 0x207   : > { %1282 = vmatprep.subr.mxu1 %v1331_v2 }
 0x208   : > { %v755_v47 = vpop.permute.xlu1 %754  ;;  %1283 = vmatpush3.msra.mxu1 %v664_v20  ;;  %v740_v48 = vpop.permute.xlu0 %739 }
 0x209   : > { %1284 = vmatprep.subr.mxu1 %v1331_v2 }
 0x20c   : > { %v719_v49 = vpop.permute.xlu1 %718  ;;  %v723_v50 = vpop.permute.xlu0 %722 }
 0x20d   : > { %v724_v16 = vsel %vm359_vm6, %v1590_v33, %v719_v49 }
 0x210   : > { %v702_v51 = vpop.permute.xlu1 %701  ;;  %v806_v52 = vpop.permute.xlu0 %805 }
 0x211   : > { %v707_v20 = vsel %vm341_vm7, %v1592_v35, %v702_v51 }
 0x214   : > { %v808_v53 = vpop.permute.xlu1 %807  ;;  %v736_v54 = vpop.permute.xlu0 %735 }
 0x215   : > { %v813_v55 = vsel %vm453_vm1, %v806_v52, %v808_v53  ;;  %v814_v56 = vsel %vm453_vm1, %v808_v53, %v810_v37  ;;  %v741_v12 = vsel %vm377_vm5, %v734_v36, %v736_v54 }
 0x216   : > { %873 = vmatprep.subr.mxu0 %v814_v56 }
 0x217   : > { %874 = vmatpush1.msra.mxu0 %v813_v55 }
 0x218   : > { %v791_v57 = vpop.permute.xlu1 %790  ;;  %v721_v58 = vpop.permute.xlu0 %720 }
 0x219   : > { %v796_v59 = vsel %vm435_vm2, %v789_v41, %v791_v57  ;;  %v797_v60 = vsel %vm435_vm2, %v791_v57, %v793_v38  ;;  %v726_v14 = vsel %vm359_vm6, %v721_v58, %v723_v50  ;;  %v725_v15 = vsel %vm359_vm6, %v719_v49, %v721_v58 }
 0x21a   : > { %875 = vmatprep.subr.mxu0 %v797_v60 }
 0x21b   : > { %876 = vmatpush1.msra.mxu0 %v796_v59 }
 0x21c   : > { %v774_v61 = vpop.permute.xlu1 %773  ;;  %v704_v62 = vpop.permute.xlu0 %703 }
 0x21d   : > { %v779_v63 = vsel %vm417_vm3, %v772_v44, %v774_v61  ;;  %v780_v4 = vsel %vm417_vm3, %v774_v61, %v776_v42  ;;  %v708_v19 = vsel %vm341_vm7, %v702_v51, %v704_v62 }
 0x21e   : > { %877 = vmatprep.subr.mxu0 %v780_v4 }
 0x21f   : > { %878 = vmatpush1.msra.mxu0 %v779_v63 }
 0x220   : > { %v757_v5 = vpop.permute.xlu1 %756  ;;  %v687_v6 = vpop.permute.xlu0 %686 }
 0x221   : > { %v762_v7 = vsel %vm399_vm4, %v755_v47, %v757_v5  ;;  %v763_v8 = vsel %vm399_vm4, %v757_v5, %v759_v45 }
 0x222   : > { %879 = vmatprep.subr.mxu0 %v763_v8 }
 0x223   : > { %880 = vmatpush1.msra.mxu0 %v762_v7 }
 0x224   : > { %v738_v9 = vpop.permute.xlu1 %737  ;;  %881 = vmatprep.subr.mxu0 %v1558_v27  ;;  %v706_v13 = vpop.permute.xlu0 %705 }
 0x225   : > { %v743_v10 = vsel %vm377_vm5, %v738_v9, %v740_v48  ;;  %882 = vmatpush1.msra.mxu0 %v1540_v21  ;;  %v742_v11 = vsel %vm377_vm5, %v736_v54, %v738_v9  ;;  %v709_v18 = vsel %vm341_vm7, %v704_v62, %v706_v13 }
 0x226   : > { %883 = vmatprep.subr.mxu0 %v742_v11  ;;  %1285 = vmatpush3.msra.mxu1 %v743_v10 }
 0x227   : > { %884 = vmatpush1.msra.mxu0 %v741_v12  ;;  %1286 = vmatprep.subr.mxu1 %v1331_v2 }
 0x228   : > { %v685_v17 = vpop.permute.xlu1 %684  ;;  %885 = vmatprep.subr.mxu0 %v725_v15  ;;  %1287 = vmatpush3.msra.mxu1 %v726_v14 }
 0x229   : > { %886 = vmatpush1.msra.mxu0 %v724_v16  ;;  %1288 = vmatprep.subr.mxu1 %v1331_v2  ;;  %v691_v21 = vsel %vm323_vm8, %v685_v17, %v687_v6 }
 0x22a   : > { %887 = vmatprep.subr.mxu0 %v708_v19  ;;  %1289 = vmatpush3.msra.mxu1 %v709_v18 }
 0x22b   : > { %888 = vmatpush1.msra.mxu0 %v707_v20  ;;  %1290 = vmatprep.subr.mxu1 %v1331_v2 }
 0x22c   : > { %v683_v22 = vpop.permute.xlu1 %682  ;;  %889 = vmatprep.subr.mxu0 %v691_v21 }
 0x22d   : > { %v690_v24 = vsel %vm323_vm8, %v683_v22, %v685_v17 }
 0x22e   : > { %890 = vmatpush1.msra.mxu0 %v690_v24 }
 0x22f   : > { %1225 = vmatmul.mubr.msk.f32.vlgmr.msra.gmra.mxu0 %vm497_vm9, %v822_v23  ;;  %1041 = vmatprep.subr.mxu0 %v1404_v0 }
 0x230   : > { %v689_v25 = vpop.permute.xlu1 %688  ;;  %1042 = vmatpush1.msra.mxu0 %v1407_v1  ;;  %1075 = vmatprep.mubr.f32.mxu0 %v1331_v2 }
 0x231   : > { %v692_v27 = vsel %vm323_vm8, %v687_v6, %v689_v25  ;;  %v854_v29 = vpop.permute.xlu0 %853 }
 0x232   : > { %1291 = vmatpush3.msra.mxu1 %v692_v27 }
 0x233   : > { %1293 = vmatmul.mubr.msk.f32.vlgmr.msra.gmra.mxu1 %vm497_vm9, %v822_v23  ;;  %1227 = vmatmul.mubr.msk.f32.vlgmr.msra.gmra.mxu0 %vm1007_vm10, %v1000_v26 }
 0x234   : > { %1295 = vmatprep.subr.mxu1 %v1331_v2  ;;  %1297 = vmatprep.mubr.msk.f32.mxu1 %vm1339_vm0, %v1331_v2 }
 0x235   : > { %1296 = vmatpush3.msra.mxu1 %v1416_v3 }
 0x237   : > { %1298 = vmatmul.mubr.msk.f32.vlgmr.msra.gmra.mxu1 %vm1007_vm10, %v1000_v26 }
 0x23d   : > { %v1005_v28 = vpop.permute.xlu1 %1004 }
 0x2ef   : > { %v925_v0 = vpop.f32.mrf.mxu0 }
 0x2f0   : > { %v926_v32 = vadd.f32 %v925_v0, %v854_v29 }
 0x2f1   : > { %v927_v1 = vpop.f32.mrf.mxu0 }
 0x2f2   : > { %v928_v36 = vadd.f32 %v927_v1, %v854_v29 }
 0x2f3   : > { %v996_v30 = vpop.f32.mrf.mxu1  ;;  %v1077_v31 = vpop.f32.mrf.mxu0 }
 0x2f4   : > { %v1078_v33 = vadd.f32 %v1077_v31, %v1005_v28  ;;  %v997_v3 = vadd.f32 %v996_v30, %v854_v29 }
 0x2f5   : > { %v1294_v34 = vpop.f32.mrf.mxu1  ;;  %v1079_v35 = vpop.f32.mrf.mxu0 }
 0x2f6   : > { %v1152_v37 = vadd.f32 %v1078_v33, %v926_v32  ;;  %v1080_v38 = vadd.f32 %v1079_v35, %v1005_v28 }
 0x2f7   : > { %v1148_v2 = vpop.f32.mrf.mxu1 }
 0x2f8   : > { %v1155_v39 = vmax.f32 %v1152_v37, 0.0  ;;  %v1153_v40 = vadd.f32 %v1080_v38, %v928_v36  ;;  %v1149_v41 = vadd.f32 %v1148_v2, %v1005_v28 }
 0x2f9   : > { %v1299_v42 = vpop.f32.mrf.mxu1 }
 0x2fa   : > { %1158 = vst [vmem:[%s305_s16] sm:$0xff] %v1155_v39  ;;  %v1156_v43 = vmax.f32 %v1153_v40, 0.0  ;;  %v1154_v44 = vadd.f32 %v1149_v41, %v997_v3 }
 0x2fc   : > { %1159 = vst [vmem:[%s305_s16 + $0x8] sm:$0xff] %v1156_v43  ;;  %v1157_v45 = vmax.f32 %v1154_v44, 0.0 }
 0x2fe   : > { %1160 = vst [vmem:[%s305_s16 + $0x10] sm:$0xff] %v1157_v45 }
 0x2ff PF: > { %s18_s27 = sadd.s32 1, %s1329_s27  }
 0x300   : > { %p15_p4 = scmp.ge.s32.totalorder %s18_s27, 4  }
 0x302   :  { %17 = sbr.rel (!%p15_p4) target bundleno = 1 (0x1), region = 82 }

</bundles_post_ra>
